<compile_context>
chip_gen: v7x
topology: tpu7x:2x2x1
jax: 0.10.0
libtpu: 0.0.40
codegen_flags: <defaults>
</compile_context>

<pallas_src>
import jax
import jax.numpy as jnp
from jax.experimental import pallas as pl
from jax.experimental.pallas import tpu as pltpu


def _vp_diffusion_kernel(x_ref, noise_ref, scales_ref, w_ref, out_ref):
    """One spatial tile: elementwise work on a dense (R, T) slab + per-row partial loss."""
    x = x_ref[...].astype(jnp.float32)        # (R, T)
    n = noise_ref[...].astype(jnp.float32)    # (R, T)

    sig = scales_ref[:, 0:1]                  # (R, 1) sigma per row
    bias = scales_ref[:, 1:2]                 # (R, 1) c_out * (c_noise*w_t + b_t)
    invw = scales_ref[:, 2:3]                 # (R, 1) loss_weight(sigma) / (C*H*W)

    # Forward diffusion.
    sn = sig * n                              # sigma * noise  (== x_noisy - x)
    x_noisy = x + sn

    # Folded synthetic net on the MXU (block-diagonal weight already carries
    # c_in and c_out):  d = x_denoised - x = sn + W_eff @ x_noisy + bias_eff.
    # (c_skip == 1; dynamic_threshold == 0 -> clip is identity.)
    d = sn + jnp.dot(w_ref[...], x_noisy, preferred_element_type=jnp.float32) + bias

    # One lane-axis reduction pass, weighted per row; single store per step.
    row = jnp.sum(d * d, axis=1, keepdims=True) * invw        # (R, 1)
    out_ref[...] = row[None]                                  # (1, R, 1)


def _pick_s_tile(S_pad, rows, itemsize, max_block_bytes):
    """Largest multiple-of-128 divisor of S_pad within the byte budget, preferring >= 2 tiles."""
    candidates = []
    tile = 128
    while tile <= S_pad:
        if rows * tile * itemsize > max_block_bytes:
            break
        if S_pad % tile == 0:
            candidates.append(tile)
        tile += 128
    if not candidates:
        # Even a single 128-lane tile blows the budget (huge B*C).
        # TODO(synk): add a row grid axis instead of shrinking lanes further.
        return 128
    multi = [c for c in candidates if S_pad // c >= 2]
    return max(multi) if multi else max(candidates)


def vp_diffusion_loss(x, t, noise, w_conv, w_time, b_time, *, beta_min, beta_d, M,
                      max_block_bytes=4 * 1024 * 1024,
                      vmem_limit_bytes=48 * 1024 * 1024):
    """Per-batch VPDiffusion losses, shape (B,), matching VPDiffusion.forward."""
    B, C, H, W = x.shape
    S = H * W
    R = B * C
    n_elems = float(C * H * W)

    # ---- per-batch scalars: vectorized wrapper-side precompute (O(B*C) work).
    t = t.reshape(B).astype(jnp.float32)
    # expm1 avoids catastrophic cancellation for small t (reference uses exp-1).
    sigma2 = jnp.expm1(0.5 * beta_d * t * t + beta_min * t)      # t_to_sigma(t)^2
    sigma = jnp.sqrt(sigma2)
    c_in = 1.0 / jnp.sqrt(sigma2 + 1.0)
    c_out = -sigma
    c_noise = (M - 1.0) * t            # sigma_to_t(t_to_sigma(t)) == t exactly
    invw = (1.0 / sigma2) / n_elems    # loss_weight(sigma) / numel-per-sample

    w_time = w_time.reshape(C).astype(jnp.float32)
    b_time = b_time.reshape(C).astype(jnp.float32)
    bias = c_noise[:, None] * w_time[None, :] + b_time[None, :]   # (B, C)
    bias_eff = (c_out[:, None] * bias).reshape(R)                 # c_out folded in

    sig_row = jnp.repeat(sigma, C)
    invw_row = jnp.repeat(invw, C)
    scales = jnp.stack([sig_row, bias_eff, invw_row], axis=1).astype(jnp.float32)  # (R, 3)

    # Block-diagonal effective weight: W_eff[bC+o, bC+k] = c_out[b]*c_in[b]*w_conv[o, k].
    wc = w_conv.astype(jnp.float32)                               # (C, C)
    w_blocks = (c_out * c_in)[:, None, None] * wc[None, :, :]     # (B, C, C)
    eye_b = jnp.eye(B, dtype=jnp.float32)
    w_eff = (eye_b[:, None, :, None] * w_blocks[:, :, None, :]).reshape(R, R)

    # ---- flatten & pad spatial axis to a multiple of 128 (keeps the pipeline
    # and the VMEM budget intact for awkward HxW).
    x2 = x.reshape(R, S)               # native dtype (f32 or bf16), no astype copy
    n2 = noise.reshape(R, S)
    S_pad = int(pl.cdiv(S, 128)) * 128
    pad = S_pad - S
    if pad:
        x2 = jnp.pad(x2, ((0, 0), (0, pad)))
        n2 = jnp.pad(n2, ((0, 0), (0, pad)))

    s_tile = _pick_s_tile(S_pad, R, x2.dtype.itemsize, max_block_bytes)
    num_tiles = S_pad // s_tile

    partials = pl.pallas_call(
        _vp_diffusion_kernel,
        out_shape=jax.ShapeDtypeStruct((num_tiles, R, 1), jnp.float32),
        grid=(num_tiles,),
        in_specs=[
            pl.BlockSpec((R, s_tile), lambda i: (0, i)),    # x, flattened (B*C, S_pad)
            pl.BlockSpec((R, s_tile), lambda i: (0, i)),    # noise
            pl.BlockSpec((R, 3), lambda i: (0, 0)),         # per-row scale table
            pl.BlockSpec((R, R), lambda i: (0, 0)),         # block-diag effective weight
        ],
        out_specs=pl.BlockSpec((1, R, 1), lambda i: (i, 0, 0)),
        compiler_params=pltpu.CompilerParams(
            dimension_semantics=("parallel",),
            vmem_limit_bytes=vmem_limit_bytes),
    )(x2, n2, scales, w_eff)

    per_row = jnp.sum(partials, axis=(0, 2))                  # (R,)
    losses = per_row.reshape(B, C).sum(axis=1)                # (B,)

    if pad:
        # Padded columns contribute exactly bias_eff^2 per row per column; subtract.
        corr = (pad * bias_eff * bias_eff * invw_row).reshape(B, C).sum(axis=1)
        losses = losses - corr
    return losses


def _reference(x, t, noise, w_conv, w_time, b_time, *, beta_min, beta_d, M):
    """Pure-JAX mirror of the PyTorch forward (same synthetic net, full t round-trip)."""
    B, C, H, W = x.shape
    sigma = jnp.sqrt(jnp.exp(0.5 * beta_d * t * t + beta_min * t) - 1.0)   # (B,)
    sig = sigma.reshape(B, 1, 1, 1)
    x_noisy = x + sig * noise
    c_out = -sig
    c_in = 1.0 / jnp.sqrt(sig * sig + 1.0)
    c_noise = (M - 1.0) * ((jnp.sqrt(beta_min ** 2 + 2.0 * beta_d
                                     * jnp.log(1.0 + sigma * sigma)) - beta_min)
                           / beta_d)                                       # (B,)
    x_in = c_in * x_noisy
    x_pred = jnp.einsum('oc,bchw->bohw', w_conv, x_in)
    x_pred = x_pred + (c_noise[:, None] * w_time[None, :]
                       + b_time[None, :])[:, :, None, None]
    x_denoised = x_noisy + c_out * x_pred
    losses = jnp.sum((x_denoised - x) ** 2, axis=(1, 2, 3))
    return losses * (1.0 / (sigma * sigma)) / float(C * H * W)


if __name__ == "__main__":
    B, C, H, W = 2, 4, 16, 16
    beta_min, beta_d, M = 0.1, 19.9, 1000.0

    key = jax.random.PRNGKey(0)
    kx, kn, kt, kw, kwt, kbt = jax.random.split(key, 6)
    x = jax.random.normal(kx, (B, C, H, W), jnp.float32)
    noise = jax.random.normal(kn, (B, C, H, W), jnp.float32)   # torch.randn_like(x)
    t = jax.random.uniform(kt, (B,), jnp.float32, 0.1, 0.9)    # `sigmas` arg of forward

    # deterministic synthetic-net parameters
    w_conv = 0.5 * jnp.eye(C, dtype=jnp.float32) \
        + 0.05 * jax.random.normal(kw, (C, C), jnp.float32)
    w_time = 0.01 * jax.random.normal(kwt, (C,), jnp.float32)
    b_time = 0.1 * jax.random.normal(kbt, (C,), jnp.float32)

    losses = vp_diffusion_loss(x, t, noise, w_conv, w_time, b_time,
                               beta_min=beta_min, beta_d=beta_d, M=M)
    losses = jax.block_until_ready(losses)

    ref = _reference(x, t, noise, w_conv, w_time, b_time,
                     beta_min=beta_min, beta_d=beta_d, M=M)
    assert losses.shape == (B,)
    assert jnp.allclose(losses, ref, rtol=1e-2, atol=1e-2), (losses, ref)

    print("KERNEL_OK")
</pallas_src>

<mosaic_0001>
module attributes {stable_mosaic.version = 11 : i64} {
  func.func @_vp_diffusion_kernel(%arg0: i32, %arg1: memref<8x128xf32, #tpu.memory_space<vmem>>, %arg2: memref<8x128xf32, #tpu.memory_space<vmem>>, %arg3: memref<8x3xf32, #tpu.memory_space<vmem>>, %arg4: memref<8x8xf32, #tpu.memory_space<vmem>>, %arg5: memref<1x8x1xf32, #tpu.memory_space<vmem>>) attributes {dimension_semantics = [#tpu.dimension_semantics<parallel>], iteration_bounds = array<i64: 2>, scalar_prefetch = 0 : i64, scratch_operands = 0 : i64, tpu.core_type = #tpu.core_type<tc>, window_params = [{transform_indices = @transform_0, window_bounds = array<i64: 8, 128>}, {transform_indices = @transform_1, window_bounds = array<i64: 8, 128>}, {pipeline_mode = #tpu.pipeline_mode<synchronous>, transform_indices = @transform_2, window_bounds = array<i64: 8, 3>}, {pipeline_mode = #tpu.pipeline_mode<synchronous>, transform_indices = @transform_3, window_bounds = array<i64: 8, 8>}, {transform_indices = @transform_4, window_bounds = array<i64: 1, 8, 1>}]} {
    %c0 = arith.constant 0 : index
    %c0_0 = arith.constant 0 : index
    %0 = vector.load %arg1[%c0, %c0_0] : memref<8x128xf32, #tpu.memory_space<vmem>>, vector<8x128xf32>
    %c0_1 = arith.constant 0 : index
    %c0_2 = arith.constant 0 : index
    %1 = vector.load %arg2[%c0_1, %c0_2] : memref<8x128xf32, #tpu.memory_space<vmem>>, vector<8x128xf32>
    %c0_3 = arith.constant 0 : index
    %c0_4 = arith.constant 0 : index
    %2 = vector.load %arg3[%c0_3, %c0_4] : memref<8x3xf32, #tpu.memory_space<vmem>>, vector<8x1xf32>
    %c0_5 = arith.constant 0 : index
    %c1 = arith.constant 1 : index
    %3 = vector.load %arg3[%c0_5, %c1] : memref<8x3xf32, #tpu.memory_space<vmem>>, vector<8x1xf32>
    %c0_6 = arith.constant 0 : index
    %c2 = arith.constant 2 : index
    %4 = vector.load %arg3[%c0_6, %c2] : memref<8x3xf32, #tpu.memory_space<vmem>>, vector<8x1xf32>
    %5 = vector.broadcast %2 : vector<8x1xf32> to vector<8x128xf32>
    %6 = arith.mulf %5, %1 : vector<8x128xf32>
    %7 = arith.addf %0, %6 : vector<8x128xf32>
    %c0_7 = arith.constant 0 : index
    %c0_8 = arith.constant 0 : index
    %8 = vector.load %arg4[%c0_7, %c0_8] : memref<8x8xf32, #tpu.memory_space<vmem>>, vector<8x8xf32>
    %cst = arith.constant dense<0.000000e+00> : vector<8x128xf32>
    %9 = tpu.matmul %8, %7, %cst {dimension_numbers = #tpu.dot_dimension_numbers<[1], [0], [0], [1], [0, 0, 1, 1], [], []>} : vector<8x8xf32>, vector<8x128xf32>, vector<8x128xf32> -> vector<8x128xf32>
    %10 = arith.addf %6, %9 : vector<8x128xf32>
    %11 = vector.broadcast %3 : vector<8x1xf32> to vector<8x128xf32>
    %12 = arith.addf %10, %11 : vector<8x128xf32>
    %13 = arith.mulf %12, %12 : vector<8x128xf32>
    %cst_9 = arith.constant dense<0.000000e+00> : vector<8xf32>
    %14 = vector.multi_reduction <add>, %13, %cst_9 [1] : vector<8x128xf32> to vector<8xf32>
    %15 = vector.shape_cast %14 : vector<8xf32> to vector<8x1xf32>
    %16 = arith.mulf %15, %4 : vector<8x1xf32>
    %17 = vector.shape_cast %16 : vector<8x1xf32> to vector<1x8x1xf32>
    %c0_10 = arith.constant 0 : index
    %c0_11 = arith.constant 0 : index
    %c0_12 = arith.constant 0 : index
    %18 = vector.load %arg5[%c0_10, %c0_11, %c0_12] : memref<1x8x1xf32, #tpu.memory_space<vmem>>, vector<1x8x1xf32>
    tpu.vector_store %arg5[%c0_10, %c0_11, %c0_12], %17 {strides = array<i32>} : memref<1x8x1xf32, #tpu.memory_space<vmem>>, vector<1x8x1xf32>,
    return
  }
  func.func @transform_0(%arg0: i32) -> (i32, i32) {
    %c0_i32 = arith.constant 0 : i32
    %c0_i32_0 = arith.constant 0 : i32
    return %c0_i32, %arg0 : i32, i32
  }
  func.func @transform_1(%arg0: i32) -> (i32, i32) {
    %c0_i32 = arith.constant 0 : i32
    %c0_i32_0 = arith.constant 0 : i32
    return %c0_i32, %arg0 : i32, i32
  }
  func.func @transform_2(%arg0: i32) -> (i32, i32) {
    %c0_i32 = arith.constant 0 : i32
    %c0_i32_0 = arith.constant 0 : i32
    %c0_i32_1 = arith.constant 0 : i32
    return %c0_i32, %c0_i32_0 : i32, i32
  }
  func.func @transform_3(%arg0: i32) -> (i32, i32) {
    %c0_i32 = arith.constant 0 : i32
    %c0_i32_0 = arith.constant 0 : i32
    %c0_i32_1 = arith.constant 0 : i32
    return %c0_i32, %c0_i32_0 : i32, i32
  }
  func.func @transform_4(%arg0: i32) -> (i32, i32, i32) {
    %c0_i32 = arith.constant 0 : i32
    %c0_i32_0 = arith.constant 0 : i32
    %c0_i32_1 = arith.constant 0 : i32
    return %arg0, %c0_i32, %c0_i32_0 : i32, i32, i32
  }
}

</mosaic_0001>

<bundles_post_ra>
// kernel: tpu_custom_call.1
= control target key start
LH: loop header
LB: loop body
LE: loop exit
PB: predicated region body
PF: predicated region fallthrough
CT: control target
= control target key end

     0   :  { %9 = vsyncpa [#allocation3], 0  ;;  %s803_s0 = inlined_call_operand.hbm [shape: f32[8,256], index: 0, kind: input, shape index: {}]   ;;  %s804_s1 = inlined_call_operand.hbm [shape: f32[8,256], index: 1, kind: input, shape index: {}]   ;;  %s805_s2 = inlined_call_operand.vmem [shape: f32[8,3], index: 2, kind: input, shape index: {}]   ;;  %s806_s3 = inlined_call_operand.vmem [shape: f32[8,8], index: 3, kind: input, shape index: {}]   ;;  %s807_s4 = inlined_call_operand.vmem [shape: f32[2,8,1], index: 4, kind: output, shape index: {}]  }
   0x1   :  { %11 = vsyncpa [#allocation3 + $0x1], 0 }
   0x2   :  { %12 = vsyncpa [#allocation5], 0 }
   0x3   :  { %14 = vsyncpa [#allocation5 + $0x1], 0  ;;  %s643_s15 = smov 0   ;;  %s645_s16 = smov 0  }
   0x4   :  { %s647_s17 = smov 0   ;;  %s649_s18 = smov 0  }
   0x5 LB: > { %s662_s19 = sadd.s32 4294967295, %s609_s18   ;;  %s665_s20 = sadd.s32 1, %s609_s18   ;;  %s609_s18 = sphi %s649_s18, %s819_s18   ;;  %s605_s17 = sphi %s647_s17, %s818_s17   ;;  %s601_s16 = sphi %s645_s16, %s817_s16   ;;  %s597_s15 = sphi %s643_s15, %s816_s15  }
   0x6   : > { %s24_s21 = ssub.s32 %s609_s18, %s665_s20  ;;  %s27_s22 = sadd.s32 1, %s605_s17 }
   0x7   : > { %p25_p0 = scmp.eq.s32.totalorder %s24_s21, 0  ;;  %p34_p1 = scmp.ne.s32.totalorder %s605_s17, %s601_s16 }
   0x8   : > { %p35_p2 = scmp.eq.s32.totalorder %s609_s18, 0  ;;  %p40_p3 = scmp.ne.s32.totalorder %s601_s16, %s597_s15 }
   0x9   : > { %s675_s23 = scalar_select %p25_p0, %s605_s17, %s27_s22  }
   0xa   : > { %p36_p4 = por %p35_p2, %p34_p1  ;;  %p41_p5 = scmp.eq.s32.totalorder %s662_s19, 0 }
   0xb   : > { %p471_p6 = scmp.lt.s32.totalorder %s609_s18, 2  ;;  %s684_s25 = sand.u32 1, %s605_s17  }
   0xc   : > { %p679_p7 = por %p41_p5, %p40_p3  ;;  %s442_s26 = sshll.u32 %s684_s25, 3 }
   0xd   : > { %s443_s27 = sshll.u32 %s609_s18, 7  ;;  %s168_s5 = scalar_lea.vmem [#allocation2], %s442_s26 }
   0xe   : > { %s809_s24 = scalar_select %p679_p7, 1, 0 }
   0xf   : > { %s693_s30 = scalar_lea.hbm %s803_s0, %s443_s27  ;;  %s175_s6 = sshll.u32 %s168_s5, 4  ;;  %s697_s6 = int_to_ptr.vmem [resolvable:$true] %s175_s6 }
  0x10   : > { %p699_p8 = pnand %p471_p6, %p36_p4  ;;  %s165_s8 = scalar_lea.sflag [#allocation3], %s684_s25 }
  0x11   : > { %s511_s9 = scalar_lea.hbm %s693_s30, 128  ;;  %s516_s12 = scalar_lea.hbm %s803_s0, 256 }
  0x12   : > { %p512_p11 = scmp.ne.s32.totalorder %s693_s30, %s511_s9  ;;  %p513_p12 = pneg %p699_p8 }
  0x13   : > { %p517_p1 = scmp.lt.u32.totalorder %s693_s30, %s803_s0  ;;  %p518_p2 = scmp.lt.u32.totalorder %s516_s12, %s511_s9 }
  0x14   : > { %p514_p13 = pnand %p513_p12, %p512_p11  ;;  %p520_p4 = scmp.lt.u32.totalorder %s511_s9, %s693_s30 }
  0x15   : > { %p519_p3 = por %p518_p2, %p517_p1 }
  0x16   : > { %p515_p0 = pneg %p514_p13 }
  0x17   : > { %p521_p5 = por %p520_p4, %p519_p3 }
  0x19   : > { %p522_p6 = pnand %p521_p5, %p515_p0 }
  0x1b   : > { %525 = shalt.err (!%p522_p6)
}
  0x1c   : > { %s526_s15 = scalar_lea.vmem %s697_s6, 128  ;;  %s611_s21 = smov [#allocation2]  }
  0x1d   : > { %p527_p11 = scmp.ne.s32.totalorder %s697_s6, %s526_s15  ;;  %s531_s22 = sshll.u32 %s611_s21, 4  ;;  %s532_s22 = int_to_ptr.vmem [resolvable:$false] %s531_s22 }
  0x1e   : > { %s533_s28 = scalar_lea.vmem %s532_s22, 256  ;;  %p534_p10 = scmp.lt.s32.totalorder %s697_s6, %s532_s22 }
  0x1f   : > { %p529_p13 = pnand %p527_p11, %p513_p12  ;;  %p535_p1 = scmp.lt.s32.totalorder %s533_s28, %s526_s15 }
  0x21   : > { %p530_p9 = pneg %p529_p13  ;;  %p536_p2 = por %p535_p1, %p534_p10 }
  0x23   : > { %p537_p3 = pnand %p536_p2, %p530_p9 }
  0x25   : > { %540 = shalt.err (!%p537_p3)
}
  0x26   : > { %467 = dma.hbm_to_vmem [thread:$0]  (!%p699_p8), %s693_s30, 128, %s697_s6, %s165_s8  }
  0x27   : > { %p811_p0 = scmp.lt.s32.totalorder %s609_s18, 3  ;;  %p812_p4 = scmp.ge.s32.totalorder %s609_s18, 1 }
  0x28   : > { %s744_s10 = scalar_lea.hbm %s804_s1, %s443_s27  ;;  %s186_s11 = scalar_lea.vmem [#allocation4], %s442_s26 }
  0x29   : > { %p735_p5 = pnand %p812_p4, %p811_p0  ;;  %s193_s12 = sshll.u32 %s186_s11, 4  ;;  %s194_s12 = int_to_ptr.vmem [resolvable:$true] %s193_s12 }
  0x2a   : > { %s183_s30 = scalar_lea.sflag [#allocation5], %s684_s25  ;;  %s541_s6 = scalar_lea.hbm %s744_s10, 128 }
  0x2b   : > { %s813_s29 = scalar_select %p735_p5, 1, 0 }
  0x2c   : > { %p542_p9 = scmp.ne.s32.totalorder %s744_s10, %s541_s6  ;;  %s546_s27 = scalar_lea.hbm %s804_s1, 256 }
  0x2d   : > { %p547_p11 = scmp.lt.u32.totalorder %s744_s10, %s804_s1  ;;  %p548_p13 = scmp.lt.u32.totalorder %s546_s27, %s541_s6 }
  0x2e   : > { %p544_p10 = pnand %p542_p9, %p513_p12  ;;  %p550_p2 = scmp.lt.u32.totalorder %s541_s6, %s744_s10 }
  0x2f   : > { %p549_p1 = por %p548_p13, %p547_p11 }
  0x30   : > { %p545_p6 = pneg %p544_p10 }
  0x31   : > { %p551_p3 = por %p550_p2, %p549_p1 }
  0x33   : > { %p552_p0 = pnand %p551_p3, %p545_p6 }
  0x35   : > { %555 = shalt.err (!%p552_p0)
}
  0x36   : > { %s556_s25 = scalar_lea.vmem %s194_s12, 128  ;;  %s612_s26 = smov [#allocation4]  }
  0x37   : > { %p557_p4 = scmp.ne.s32.totalorder %s194_s12, %s556_s25  ;;  %s561_s15 = sshll.u32 %s612_s26, 4  ;;  %s562_s15 = int_to_ptr.vmem [resolvable:$false] %s561_s15 }
  0x38   : > { %s563_s21 = scalar_lea.vmem %s562_s15, 256  ;;  %p564_p7 = scmp.lt.s32.totalorder %s194_s12, %s562_s15 }
  0x39   : > { %p559_p9 = pnand %p557_p4, %p513_p12  ;;  %p565_p5 = scmp.lt.s32.totalorder %s563_s21, %s556_s25 }
  0x3b   : > { %p560_p10 = pneg %p559_p9  ;;  %p566_p11 = por %p565_p5, %p564_p7 }
  0x3d   : > { %p567_p13 = pnand %p566_p11, %p560_p10 }
  0x3f   : > { %570 = shalt.err (!%p567_p13)
}
  0x40   : > { %470 = dma.hbm_to_vmem [thread:$0]  (!%p699_p8), %s744_s10, 128, %s194_s12, %s183_s30  }
  0x41   : > { %p814_p6 = scmp.ne.s32.totalorder %s813_s29, 0 }
  0x42   : > { %s204_s22 = sand.u32 (!%p814_p6), 1, %s601_s16   ;;  %p815_p12 = scmp.ne.s32.totalorder (!%p814_p6), %s809_s24, 0 }
  0x43   : > { %202 = sbr.rel (%p814_p6) target bundleno = 690 (0x2b2), region = 36  ;;  %s447_s28 = sshll.u32 (!%p814_p6), %s204_s22, 3 }
  0x44   : > { %s205_s5 = scalar_lea.sflag (!%p814_p6), [#allocation3], %s204_s22  ;;  %s208_s9 = scalar_lea.vmem (!%p814_p6), [#allocation2], %s447_s28 }
  0x4a   : > { %588 = dma.done.wait (%p815_p12), %s205_s5, 128  }
  0x4b   : > { %590 = vsyncadd (%p815_p12), %s205_s5, 4294967168  ;;  %s214_s11 = scalar_lea.sflag [#allocation5], %s204_s22  ;;  %s217_s6 = scalar_lea.vmem [#allocation4], %s447_s28 }
  0x4c   : > { %592 = dma.done.wait (%p815_p12), %s214_s11, 128  }
  0x4d   : > { %594 = vsyncadd (%p815_p12), %s214_s11, 4294967168  ;;  %v613_v0 = vmov 0   ;;  %v252_v1 = vld [vmem:[%s805_s2] sm:$0xff]  ;;  %v614_v2 = vmov 0.0   ;;  %vm615_vm0 = vmmov 0   ;;  %v616_v3 = vmov 1  }
  0x4e   : > { %509 = vset.pattern.permute.xlu0 %v613_v0  ;;  %455 = vmatprep.subr.mxu0 %v614_v2  ;;  %v251_v4 = vld [vmem:[%s217_s6] sm:$0xff]  ;;  %v250_v6 = vld [vmem:[%s208_s9] sm:$0xff]  ;;  %vm261_vm1 = vcmask 64512   ;;  %s617_s12 = smov 126   ;;  %p246_p7 = scmp.lt.s32.totalorder %s662_s19, 1  ;;  %vm349_vm2 = vcmask 7168  }
  0x4f   : > { %255 = vperm.xlu0 %509, %v252_v1   ;;  %457 = vmatprep.mubr.msk.f32.mxu0 %vm615_vm0, %v614_v2  ;;  %v260_v9 = vld [vmem:[%s806_s3] sm:$0xff] }
  0x50   : > { %s821_s19 = smov (!%p246_p7, %s662_s19), 1 }
  0x51   : > { %s449_s30 = sshll.u32 %s821_s19, 3 }
  0x52   : > { %s249_s27 = scalar_lea.vmem %s807_s4, %s449_s30 }
  0x53   : > { %510 = vset.pattern.permute.xlu0 %v616_v3 }
  0x54   : > { %337 = vperm.xlu0 %510, %v252_v1  }
  0xce   : > { %v256_v5 = vpop.permute.xlu0 %255 }
  0xcf   : > { %v258_v7 = vmul.f32 %v256_v5, %v251_v4 }
  0xd1   : > { %v259_v8 = vadd.f32 %v258_v7, %v250_v6 }
  0xd3   : > { %456 = vmatpush3.msra.mxu0 %v259_v8  ;;  %v338_v11 = vpop.permute.xlu0 %337 }
  0xd4   : > { %458 = vmatmul.mubr.msk.f32.vlgmr.msra.gmra.mrb[0].mxu0 %vm261_vm1, %v260_v9 }
 0x1a7   : > { %v331_v10 = vpop.f32.mrb[0].mxu0 }
 0x1a8   : > { %v335_v12 = vadd.f32 %v331_v10, %v258_v7  ;;  %v459_v13 = vpop.f32.mrb[1].mxu0 }
 0x1aa   : > { %v340_v14 = vadd.f32 %v338_v11, %v335_v12 }
 0x1ac   : > { %v341_v15 = vmul.f32 %v340_v14, %v340_v14 }
 0x1ae   : > { %342 = vadd.xlane.f32.xlu1 %v341_v15 }
 0x23b   : > { %v343_v16 = vpop.xlane.xlu1 %342 }
 0x23c   : > { %v344_v17 = vmul.f32 %v343_v16, %v252_v1 }
 0x23e   : > { %346 = vrot.lane.b32.xlu1 %v344_v17, %s617_s12 }
 0x2b0   : > { %v347_v18 = vpop.permute.xlu1 %346 }
 0x2b1   : > { %350 = vst.msk [vmem:[%s249_s27] sm:$0xff] %vm349_vm2, %v347_v18 }
 0x2b2 PF: > { %p17_p8 = scmp.ge.s32.totalorder %s665_s20, 4   ;;  %s816_s15 = smov %s601_s16 }
 0x2b3   : > { %s817_s16 = smov %s605_s17  ;;  %s818_s17 = smov %s675_s23 }
 0x2b4   : > { %s819_s18 = smov %s665_s20  ;;  %19 = sbr.rel (!%p17_p8) target bundleno = 5 (0x5), region = 89 }
 0x2bb   :  { %370 = vsyncpa [#allocation3], 1 }
 0x2bc   :  { %372 = vsyncpa [#allocation3 + $0x1], 1 }
 0x2bd   :  { %373 = vsyncpa [#allocation5], 1 }
 0x2be   :  { %375 = vsyncpa [#allocation5 + $0x1], 1 }

</bundles_post_ra>
